<compile_context>
chip_gen: v5e
topology: v5e:2x2
jax: 0.10.0
libtpu: 0.0.40
codegen_flags: <defaults>
</compile_context>

<pallas_src>
import math

import jax
import jax.numpy as jnp
from jax.experimental import pallas as pl
from jax.experimental.pallas import tpu as pltpu


def dyt_kernel(alpha_ref, gamma_ref, beta_ref, x_ref, o_ref):
    # alpha_ref: (1, 1) scalar in SMEM.
    # gamma_ref / beta_ref: (1, Df) in VMEM; constant block index across the
    #   row grid axis -> fetched once, resident for the whole grid.
    # x_ref / o_ref: (block_rows, Df) in VMEM.
    a = alpha_ref[0, 0].astype(jnp.float32)
    x = x_ref[...].astype(jnp.float32)
    # TODO(synk): on v7x with bf16 I/O, if xprof shows the EUP slot binding,
    # compute tanh in bf16 (bf16 EUP exists on v6e/v7x) and keep only the
    # gamma*t+beta FMA in f32; keep f32 tanh on v5e (no bf16 EUP/VPU).
    t = jnp.tanh(x * a)                                   # EUP; hidden when HBM-bound
    y = gamma_ref[...].astype(jnp.float32) * t + beta_ref[...].astype(jnp.float32)
    o_ref[...] = y.astype(o_ref.dtype)


def _default_vmem_limit_bytes():
    """~half of physical VMEM: ~32 MiB on v7x, ~64 MiB on v5e/v6e."""
    cap = 128 * 1024 * 1024
    try:
        info = pltpu.get_tpu_info()
        cap = int(getattr(info, "vmem_capacity_bytes", cap))
    except Exception:
        pass
    return max(16 * 1024 * 1024, cap // 2)


def dyt_forward(x, alpha, gamma, beta=None, *, target_block_rows=1024,
                vmem_limit_bytes=None):
    """y = gamma * tanh(alpha * x) + beta, broadcast over the last axis.

    x: (..., D); alpha: shape (1,) or scalar; gamma/beta: (D,).
    """
    orig_shape = x.shape
    D = orig_shape[-1]
    R = 1
    for s in orig_shape[:-1]:
        R *= s
    x2d = x.reshape(R, D)

    if beta is None:  # config.bias == False -> no beta parameter
        beta = jnp.zeros((D,), dtype=gamma.dtype)

    if vmem_limit_bytes is None:
        vmem_limit_bytes = _default_vmem_limit_bytes()

    # ---- Lane folding: make the lane dim a multiple of 128 when D isn't.
    # Row-major reshape is free (no data movement); only fold if rows divide.
    k = 1
    if D % 128 != 0:
        k_cand = math.lcm(D, 128) // D
        if R % k_cand == 0 and k_cand * D <= 4096:
            k = k_cand
    if k > 1:
        x2d = x2d.reshape(R // k, k * D)
        gamma_l = jnp.tile(gamma, k)
        beta_l = jnp.tile(beta, k)
    else:
        gamma_l, beta_l = gamma, beta

    Rf, Df = x2d.shape
    itemsize = jnp.dtype(x2d.dtype).itemsize
    sublane = (4 // itemsize) * 8          # 8 for f32, 16 for bf16, 32 for int8

    # ---- Row tiling: biggest row block whose double-buffered x+out tiles fit
    # ~85% of the scoped VMEM limit (gamma/beta/alpha only need a few KB).
    budget = int(vmem_limit_bytes * 0.85)
    max_rows = max(sublane, budget // (4 * Df * itemsize))
    block_rows = min(target_block_rows, max_rows)
    block_rows = max(sublane, (block_rows // sublane) * sublane)
    if Rf > sublane:
        # Keep at least 2 grid steps so v7x's two TCs can split the axis.
        half = pl.cdiv(pl.cdiv(Rf, 2), sublane) * sublane
        block_rows = min(block_rows, half)
    else:
        block_rows = Rf                    # full-dim block (allowed by layout rule)

    grid = (pl.cdiv(Rf, block_rows),)      # ragged last block handled by Pallas

    alpha2d = jnp.asarray(alpha, dtype=jnp.float32).reshape(1, 1)
    gamma2d = gamma_l.reshape(1, Df)
    beta2d = beta_l.reshape(1, Df)

    out2d = pl.pallas_call(
        dyt_kernel,
        out_shape=jax.ShapeDtypeStruct((Rf, Df), x.dtype),
        grid_spec=pltpu.PrefetchScalarGridSpec(
            num_scalar_prefetch=0,
            grid=grid,
            in_specs=[
                # scalar alpha lives in SMEM, passed whole to every grid step
                pl.BlockSpec(memory_space=pltpu.MemorySpace.SMEM),
                # gamma / beta: constant block index -> fetched once, resident
                pl.BlockSpec((1, Df), lambda i: (0, 0)),
                pl.BlockSpec((1, Df), lambda i: (0, 0)),
                # x: tiled over rows only; fully contiguous HBM DMA
                pl.BlockSpec((block_rows, Df), lambda i: (i, 0)),
            ],
            out_specs=pl.BlockSpec((block_rows, Df), lambda i: (i, 0)),
        ),
        compiler_params=pltpu.CompilerParams(
            dimension_semantics=("parallel",),
            vmem_limit_bytes=int(vmem_limit_bytes),
        ),
    )(alpha2d, gamma2d, beta2d, x2d)

    out = out2d
    if k > 1:
        out = out.reshape(R, D)            # free reshape back (row-major)
    return out.reshape(orig_shape)


if __name__ == "__main__":
    # Deterministic "config": n_embd=32, alpha init=0.5, bias=True
    n_embd = 32
    alpha_init = 0.5
    batch, seq = 2, 8

    # Parameter init per the module's __init__ (synthetic, no checkpoint load)
    alpha = jnp.ones((1,), dtype=jnp.float32) * alpha_init
    gamma = jnp.ones((n_embd,), dtype=jnp.float32)
    beta = jnp.zeros((n_embd,), dtype=jnp.float32)

    key = jax.random.PRNGKey(0)
    x = jax.random.normal(key, (batch, seq, n_embd), dtype=jnp.float32)

    y = dyt_forward(x, alpha, gamma, beta)
    y = jax.block_until_ready(y)

    # Reference check (pure JAX)
    y_ref = gamma * jnp.tanh(x * alpha) + beta
    assert y.shape == x.shape
    assert jnp.allclose(y, y_ref, atol=1e-6, rtol=1e-6)

    print("KERNEL_OK")
</pallas_src>

<mosaic_0001>
module attributes {stable_mosaic.version = 11 : i64} {
  func.func @dyt_kernel(%arg0: i32, %arg1: memref<1x1xf32, #tpu.memory_space<smem>>, %arg2: memref<1x128xf32, #tpu.memory_space<vmem>>, %arg3: memref<1x128xf32, #tpu.memory_space<vmem>>, %arg4: memref<4x128xf32, #tpu.memory_space<vmem>>, %arg5: memref<4x128xf32, #tpu.memory_space<vmem>>) attributes {dimension_semantics = [#tpu.dimension_semantics<parallel>], iteration_bounds = array<i64: 1>, scalar_prefetch = 0 : i64, scratch_operands = 0 : i64, tpu.core_type = #tpu.core_type<tc>, window_params = [{transform_indices = @transform_0, window_bounds = array<i64: 1, 1>}, {pipeline_mode = #tpu.pipeline_mode<synchronous>, transform_indices = @transform_1, window_bounds = array<i64: 1, 128>}, {pipeline_mode = #tpu.pipeline_mode<synchronous>, transform_indices = @transform_2, window_bounds = array<i64: 1, 128>}, {transform_indices = @transform_3, window_bounds = array<i64: 4, 128>}, {transform_indices = @transform_4, window_bounds = array<i64: 4, 128>}]} {
    %c0 = arith.constant 0 : index
    %c0_0 = arith.constant 0 : index
    %0 = memref.load %arg1[%c0, %c0_0] : memref<1x1xf32, #tpu.memory_space<smem>>
    %c0_1 = arith.constant 0 : index
    %c0_2 = arith.constant 0 : index
    %1 = vector.load %arg4[%c0_1, %c0_2] : memref<4x128xf32, #tpu.memory_space<vmem>>, vector<4x128xf32>
    %2 = vector.broadcast %0 : f32 to vector<4x128xf32>
    %3 = arith.mulf %1, %2 : vector<4x128xf32>
    %4 = math.tanh %3 : vector<4x128xf32>
    %c0_3 = arith.constant 0 : index
    %c0_4 = arith.constant 0 : index
    %5 = vector.load %arg2[%c0_3, %c0_4] : memref<1x128xf32, #tpu.memory_space<vmem>>, vector<1x128xf32>
    %6 = vector.broadcast %5 : vector<1x128xf32> to vector<4x128xf32>
    %7 = arith.mulf %6, %4 : vector<4x128xf32>
    %c0_5 = arith.constant 0 : index
    %c0_6 = arith.constant 0 : index
    %8 = vector.load %arg3[%c0_5, %c0_6] : memref<1x128xf32, #tpu.memory_space<vmem>>, vector<1x128xf32>
    %9 = vector.broadcast %8 : vector<1x128xf32> to vector<4x128xf32>
    %10 = arith.addf %7, %9 : vector<4x128xf32>
    %c0_7 = arith.constant 0 : index
    %c0_8 = arith.constant 0 : index
    %11 = vector.load %arg5[%c0_7, %c0_8] : memref<4x128xf32, #tpu.memory_space<vmem>>, vector<4x128xf32>
    tpu.vector_store %arg5[%c0_7, %c0_8], %10 {strides = array<i32>} : memref<4x128xf32, #tpu.memory_space<vmem>>, vector<4x128xf32>,
    return
  }
  func.func @transform_0(%arg0: i32) -> (i32, i32) {
    %c0_i32 = arith.constant 0 : i32
    %c0_i32_0 = arith.constant 0 : i32
    %c0_i32_1 = arith.constant 0 : i32
    return %c0_i32, %c0_i32_0 : i32, i32
  }
  func.func @transform_1(%arg0: i32) -> (i32, i32) {
    %c0_i32 = arith.constant 0 : i32
    %c0_i32_0 = arith.constant 0 : i32
    %c0_i32_1 = arith.constant 0 : i32
    return %c0_i32, %c0_i32_0 : i32, i32
  }
  func.func @transform_2(%arg0: i32) -> (i32, i32) {
    %c0_i32 = arith.constant 0 : i32
    %c0_i32_0 = arith.constant 0 : i32
    %c0_i32_1 = arith.constant 0 : i32
    return %c0_i32, %c0_i32_0 : i32, i32
  }
  func.func @transform_3(%arg0: i32) -> (i32, i32) {
    %c0_i32 = arith.constant 0 : i32
    %c0_i32_0 = arith.constant 0 : i32
    return %arg0, %c0_i32 : i32, i32
  }
  func.func @transform_4(%arg0: i32) -> (i32, i32) {
    %c0_i32 = arith.constant 0 : i32
    %c0_i32_0 = arith.constant 0 : i32
    return %arg0, %c0_i32 : i32, i32
  }
}

</mosaic_0001>

<bundles_post_ra>
// kernel: tpu_custom_call.1
= control target key start
LH: loop header
LB: loop body
LE: loop exit
PB: predicated region body
PF: predicated region fallthrough
CT: control target
= control target key end

     0   :  { %10 = vsyncpa [#allocation4], 0  ;;  %s166_s0 = inlined_call_operand.<no memory space> [shape: f32[1,1], index: 0, kind: input, shape index: {}]   ;;  %s167_s1 = inlined_call_operand.vmem [shape: f32[1,128], index: 1, kind: input, shape index: {}]   ;;  %s168_s2 = inlined_call_operand.vmem [shape: f32[1,128], index: 2, kind: input, shape index: {}]   ;;  %s169_s3 = inlined_call_operand.hbm [shape: f32[4,128], index: 3, kind: input, shape index: {}]   ;;  %s170_s4 = inlined_call_operand.hbm [shape: f32[4,128], index: 4, kind: output, shape index: {}]  }
   0x1   :  { %11 = vsyncpa [#allocation5], 0  ;;  %s23_s17 = sshll.u32 %s169_s3, 4  ;;  %s124_s18 = smov [#allocation3]   ;;  %s24_s17 = int_to_ptr.hbm [resolvable:$true] %s23_s17 }
   0x2   :  { %s25_s19 = sshll.u32 %s124_s18, 4  ;;  %s26_s19 = int_to_ptr.vmem [resolvable:$true] %s25_s19 }
   0x3   :  { %28 = dma.hbm_to_vmem [thread:$0]  %s24_s17, 64, %s26_s19, [#allocation4]  }
   0x4   :  { %120 = dma.done.wait [#allocation4], 64  }
   0x5   :  { %121 = vsyncadd [#allocation4], 4294967232  ;;  %v35_v0 = vstv %s166_s0  ;;  %v34_v1 = vld [vmem:[#allocation3] sm:$0xf]  ;;  %s125_s25 = smov [#allocation6]   ;;  %s56_s29 = sshll.u32 %s170_s4, 4  ;;  %s57_s29 = int_to_ptr.hbm [resolvable:$true] %s56_s29 }
   0x6   :  { %v36_v2 = vmul.f32 %v35_v0, %v34_v1  ;;  %v68_v3 = vld [vmem:[%s167_s1] ss:$0 sm:$0xff]  ;;  %s54_s26 = sshll.u32 %s125_s25, 4  ;;  %s55_s26 = int_to_ptr.vmem [resolvable:$true] %s54_s26 }
   0x7   :  { %v69_v4 = vld [vmem:[%s168_s2] ss:$0 sm:$0xff] }
   0x8   :  { %70 = vtanh.f32 %v36_v2 }
   0xe   :  { %v71_v5 = vpop.eup %70 }
   0xf   :  { %v42_v6 = vmul.f32 %v71_v5, %v68_v3 }
  0x11   :  { %v47_v7 = vadd.f32 %v69_v4, %v42_v6 }
  0x13   :  { %48 = vst [vmem:[#allocation6] sm:$0xf] %v47_v7 }
  0x14   :  { %59 = dma.vmem_to_hbm [thread:$0]  %s55_s26, 64, %s57_s29, [#allocation5]  }
  0x15   :  { %122 = dma.done.wait [#allocation5], 64  }
  0x16   :  { %123 = vsyncadd [#allocation5], 4294967232 }
  0x17   :  { %64 = vsyncpa [#allocation4], 1 }
  0x18   :  { %65 = vsyncpa [#allocation5], 1 }

</bundles_post_ra>
